<compile_context>
chip_gen: v6e
topology: v6e:2x2x1
jax: 0.10.0
libtpu: 0.0.40
codegen_flags: <defaults>
</compile_context>

<pallas_src>
import jax
import jax.numpy as jnp
from jax.experimental import pallas as pl
from jax.experimental.pallas import tpu as pltpu


def mlp_kernel(x_ref, w1_ref, b1_ref, w2_ref, b2_ref, w3_ref, b3_ref, o_ref):
    # Weights arrive pre-transposed as [in, out] bf16; biases as f32 [1, out].
    # Cast x to the compute dtype in-kernel (rides free VPU slots under MXU work).
    x = x_ref[...].astype(w1_ref.dtype)

    # fc1 + ReLU (bf16 MXU, f32 accumulation, f32 epilogue)
    h1 = jnp.dot(x, w1_ref[...], preferred_element_type=jnp.float32)
    h1 = jnp.maximum(h1 + b1_ref[...], 0.0).astype(w2_ref.dtype)

    # fc2 + ReLU
    h2 = jnp.dot(h1, w2_ref[...], preferred_element_type=jnp.float32)
    h2 = jnp.maximum(h2 + b2_ref[...], 0.0).astype(w3_ref.dtype)

    # fc3 (no activation)
    out = jnp.dot(h2, w3_ref[...], preferred_element_type=jnp.float32) + b3_ref[...]
    o_ref[...] = out.astype(o_ref.dtype)


def _round_up(x, m):
    return ((x + m - 1) // m) * m


def _tensorcores_per_chip():
    # v7x has 2 TensorCores per chip; v5e/v6e have 1.
    try:
        kind = jax.devices()[0].device_kind.lower()
    except Exception:
        return 1
    return 2 if "7" in kind else 1


def _pick_tile_b(B, D_in, H1, H2, D_out, num_cores):
    # Rough per-step VMEM bytes per batch row: double-buffered f32 x + f32 out
    # tiles, plus the f32/bf16 intermediates (h1/h2) kept live in the body.
    per_row = 2 * 4 * D_in + 2 * 4 * D_out + 4 * (H1 + H2) + 2 * (H1 + H2)
    budget = 8 * 1024 * 1024  # safe under v5e 16 MiB / v7x 32 MiB default scoped VMEM
    cap = 4096
    while cap > 16 and cap * per_row > budget:
        cap //= 2
    tile = min(cap, _round_up(B, 16))  # multiple of 16 for bf16 sublane packing
    if num_cores > 1 and B >= 256:
        # Force >= num_cores grid steps so the "parallel" batch axis can be
        # sharded across TensorCores (v7x megacore).
        tile = min(tile, _round_up(pl.cdiv(B, num_cores), 16))
    return max(tile, 16)


def prepare_mlp_params(w1, b1, w2, b2, w3, b3, compute_dtype=jnp.bfloat16):
    """ONE-TIME (model-init) weight prep: transpose PyTorch-layout [out, in]
    weights to [in, out], cast to the MXU compute dtype, and reshape biases to
    f32 [1, out]. Keeps the per-forward hot path down to a single pallas_call."""
    return dict(
        w1t=w1.T.astype(compute_dtype),              # [D_in, H1]
        b1r=b1.reshape(1, -1).astype(jnp.float32),   # [1, H1]
        w2t=w2.T.astype(compute_dtype),              # [H1, H2]
        b2r=b2.reshape(1, -1).astype(jnp.float32),   # [1, H2]
        w3t=w3.T.astype(compute_dtype),              # [H2, D_out]
        b3r=b3.reshape(1, -1).astype(jnp.float32),   # [1, D_out]
    )


def three_layer_mlp(x, params, *, tile_b=None):
    """x: [B, D_in] float array; params: output of prepare_mlp_params."""
    w1t, b1r = params["w1t"], params["b1r"]
    w2t, b2r = params["w2t"], params["b2r"]
    w3t, b3r = params["w3t"], params["b3r"]

    B, D_in = x.shape
    H1 = w1t.shape[1]
    H2 = w2t.shape[1]
    D_out = w3t.shape[1]
    out_dtype = x.dtype

    if tile_b is None:
        tile_b = _pick_tile_b(B, D_in, H1, H2, D_out, _tensorcores_per_chip())

    # Pad awkward batch sizes up to a tile multiple (bounded, pipelined per-step
    # DMA instead of one giant block); slice the rows back afterwards.
    B_pad = _round_up(B, tile_b)
    x_in = x if B_pad == B else jnp.pad(x, ((0, B_pad - B), (0, 0)))
    grid = (B_pad // tile_b,)

    in_specs = [
        pl.BlockSpec((tile_b, D_in), lambda i: (i, 0)),  # x: batch-tiled
        pl.BlockSpec((D_in, H1), lambda i: (0, 0)),      # w1t (resident)
        pl.BlockSpec((1, H1), lambda i: (0, 0)),         # b1
        pl.BlockSpec((H1, H2), lambda i: (0, 0)),        # w2t (resident)
        pl.BlockSpec((1, H2), lambda i: (0, 0)),         # b2
        pl.BlockSpec((H2, D_out), lambda i: (0, 0)),     # w3t (resident)
        pl.BlockSpec((1, D_out), lambda i: (0, 0)),      # b3
    ]
    out_specs = pl.BlockSpec((tile_b, D_out), lambda i: (i, 0))

    out = pl.pallas_call(
        mlp_kernel,
        out_shape=jax.ShapeDtypeStruct((B_pad, D_out), out_dtype),
        grid_spec=pltpu.PrefetchScalarGridSpec(
            num_scalar_prefetch=0,
            grid=grid,
            in_specs=in_specs,
            out_specs=out_specs,
        ),
        compiler_params=pltpu.CompilerParams(
            dimension_semantics=("parallel",),
        ),
    )(x_in, w1t, b1r, w2t, b2r, w3t, b3r)

    return out if B_pad == B else out[:B]


def init_linear(key, in_features, out_features, dtype=jnp.float32):
    """Deterministic init mimicking nn.Linear default (uniform +/- 1/sqrt(in))."""
    kw, kb = jax.random.split(key)
    bound = 1.0 / (in_features ** 0.5)
    w = jax.random.uniform(kw, (out_features, in_features), dtype, -bound, bound)
    b = jax.random.uniform(kb, (out_features,), dtype, -bound, bound)
    return w, b


def _ref_forward(x, w1, b1, w2, b2, w3, b3, compute_dtype=jnp.bfloat16):
    """Plain-JAX reference emulating the kernel's precision (bf16 operands,
    f32 accumulation / epilogue) — same math as the PyTorch forward."""
    def cast(a):
        return a.astype(compute_dtype).astype(jnp.float32)
    h = jnp.maximum(cast(x) @ cast(w1).T + b1, 0.0)
    h = jnp.maximum(cast(h) @ cast(w2).T + b2, 0.0)
    return cast(h) @ cast(w3).T + b3


if __name__ == "__main__":
    # Shapes consistent with the module: batch=16, input_dim=32,
    # hidden_sizes=(64, 64), output_size=16.
    B, D_in = 16, 32
    H1, H2 = 64, 64
    D_out = 16

    key = jax.random.PRNGKey(0)
    kx, k1, k2, k3 = jax.random.split(key, 4)

    x = jax.random.normal(kx, (B, D_in), jnp.float32)
    w1, b1 = init_linear(k1, D_in, H1)
    w2, b2 = init_linear(k2, H1, H2)
    w3, b3 = init_linear(k3, H2, D_out)

    # One-time weight prep at "model init"; the per-call path is one pallas_call.
    params = jax.tree_util.tree_map(
        jax.block_until_ready, prepare_mlp_params(w1, b1, w2, b2, w3, b3))

    fwd = jax.jit(three_layer_mlp)
    out = jax.block_until_ready(fwd(x, params))

    ref = _ref_forward(x, w1, b1, w2, b2, w3, b3)
    assert out.shape == (B, D_out)
    assert jnp.allclose(out, ref, atol=1e-2, rtol=1e-2), (
        float(jnp.max(jnp.abs(out - ref))))

    print("KERNEL_OK")
</pallas_src>

<mosaic_0001>
module attributes {stable_mosaic.version = 11 : i64} {
  func.func @mlp_kernel(%arg0: i32, %arg1: memref<16x32xf32, #tpu.memory_space<vmem>>, %arg2: memref<32x64xbf16, #tpu.memory_space<vmem>>, %arg3: memref<1x64xf32, #tpu.memory_space<vmem>>, %arg4: memref<64x64xbf16, #tpu.memory_space<vmem>>, %arg5: memref<1x64xf32, #tpu.memory_space<vmem>>, %arg6: memref<64x16xbf16, #tpu.memory_space<vmem>>, %arg7: memref<1x16xf32, #tpu.memory_space<vmem>>, %arg8: memref<16x16xf32, #tpu.memory_space<vmem>>) attributes {dimension_semantics = [#tpu.dimension_semantics<parallel>], iteration_bounds = array<i64: 1>, scalar_prefetch = 0 : i64, scratch_operands = 0 : i64, tpu.core_type = #tpu.core_type<tc>, window_params = [{transform_indices = @transform_0, window_bounds = array<i64: 16, 32>}, {pipeline_mode = #tpu.pipeline_mode<synchronous>, transform_indices = @transform_1, window_bounds = array<i64: 32, 64>}, {pipeline_mode = #tpu.pipeline_mode<synchronous>, transform_indices = @transform_2, window_bounds = array<i64: 1, 64>}, {pipeline_mode = #tpu.pipeline_mode<synchronous>, transform_indices = @transform_3, window_bounds = array<i64: 64, 64>}, {pipeline_mode = #tpu.pipeline_mode<synchronous>, transform_indices = @transform_4, window_bounds = array<i64: 1, 64>}, {pipeline_mode = #tpu.pipeline_mode<synchronous>, transform_indices = @transform_5, window_bounds = array<i64: 64, 16>}, {pipeline_mode = #tpu.pipeline_mode<synchronous>, transform_indices = @transform_6, window_bounds = array<i64: 1, 16>}, {transform_indices = @transform_7, window_bounds = array<i64: 16, 16>}]} {
    %c0 = arith.constant 0 : index
    %c0_0 = arith.constant 0 : index
    %0 = vector.load %arg1[%c0, %c0_0] : memref<16x32xf32, #tpu.memory_space<vmem>>, vector<16x32xf32>
    %1 = arith.truncf %0 : vector<16x32xf32> to vector<16x32xbf16>
    %c0_1 = arith.constant 0 : index
    %c0_2 = arith.constant 0 : index
    %2 = vector.load %arg2[%c0_1, %c0_2] : memref<32x64xbf16, #tpu.memory_space<vmem>>, vector<32x64xbf16>
    %cst = arith.constant dense<0.000000e+00> : vector<16x64xf32>
    %3 = tpu.matmul %1, %2, %cst {dimension_numbers = #tpu.dot_dimension_numbers<[1], [0], [0], [1], [0, 0, 1, 1], [], []>} : vector<16x32xbf16>, vector<32x64xbf16>, vector<16x64xf32> -> vector<16x64xf32>
    %c0_3 = arith.constant 0 : index
    %c0_4 = arith.constant 0 : index
    %4 = vector.load %arg3[%c0_3, %c0_4] : memref<1x64xf32, #tpu.memory_space<vmem>>, vector<1x64xf32>
    %5 = vector.broadcast %4 : vector<1x64xf32> to vector<16x64xf32>
    %6 = arith.addf %3, %5 : vector<16x64xf32>
    %cst_5 = arith.constant 0.000000e+00 : f32
    %7 = vector.broadcast %cst_5 : f32 to vector<16x64xf32>
    %8 = arith.maximumf %6, %7 : vector<16x64xf32>
    %9 = arith.truncf %8 : vector<16x64xf32> to vector<16x64xbf16>
    %c0_6 = arith.constant 0 : index
    %c0_7 = arith.constant 0 : index
    %10 = vector.load %arg4[%c0_6, %c0_7] : memref<64x64xbf16, #tpu.memory_space<vmem>>, vector<64x64xbf16>
    %cst_8 = arith.constant dense<0.000000e+00> : vector<16x64xf32>
    %11 = tpu.matmul %9, %10, %cst_8 {dimension_numbers = #tpu.dot_dimension_numbers<[1], [0], [0], [1], [0, 0, 1, 1], [], []>} : vector<16x64xbf16>, vector<64x64xbf16>, vector<16x64xf32> -> vector<16x64xf32>
    %c0_9 = arith.constant 0 : index
    %c0_10 = arith.constant 0 : index
    %12 = vector.load %arg5[%c0_9, %c0_10] : memref<1x64xf32, #tpu.memory_space<vmem>>, vector<1x64xf32>
    %13 = vector.broadcast %12 : vector<1x64xf32> to vector<16x64xf32>
    %14 = arith.addf %11, %13 : vector<16x64xf32>
    %cst_11 = arith.constant 0.000000e+00 : f32
    %15 = vector.broadcast %cst_11 : f32 to vector<16x64xf32>
    %16 = arith.maximumf %14, %15 : vector<16x64xf32>
    %17 = arith.truncf %16 : vector<16x64xf32> to vector<16x64xbf16>
    %c0_12 = arith.constant 0 : index
    %c0_13 = arith.constant 0 : index
    %18 = vector.load %arg6[%c0_12, %c0_13] : memref<64x16xbf16, #tpu.memory_space<vmem>>, vector<64x16xbf16>
    %cst_14 = arith.constant dense<0.000000e+00> : vector<16x16xf32>
    %19 = tpu.matmul %17, %18, %cst_14 {dimension_numbers = #tpu.dot_dimension_numbers<[1], [0], [0], [1], [0, 0, 1, 1], [], []>} : vector<16x64xbf16>, vector<64x16xbf16>, vector<16x16xf32> -> vector<16x16xf32>
    %c0_15 = arith.constant 0 : index
    %c0_16 = arith.constant 0 : index
    %20 = vector.load %arg7[%c0_15, %c0_16] : memref<1x16xf32, #tpu.memory_space<vmem>>, vector<1x16xf32>
    %21 = vector.broadcast %20 : vector<1x16xf32> to vector<16x16xf32>
    %22 = arith.addf %19, %21 : vector<16x16xf32>
    %c0_17 = arith.constant 0 : index
    %c0_18 = arith.constant 0 : index
    %23 = vector.load %arg8[%c0_17, %c0_18] : memref<16x16xf32, #tpu.memory_space<vmem>>, vector<16x16xf32>
    tpu.vector_store %arg8[%c0_17, %c0_18], %22 {strides = array<i32>} : memref<16x16xf32, #tpu.memory_space<vmem>>, vector<16x16xf32>,
    return
  }
  func.func @transform_0(%arg0: i32) -> (i32, i32) {
    %c0_i32 = arith.constant 0 : i32
    %c0_i32_0 = arith.constant 0 : i32
    return %arg0, %c0_i32 : i32, i32
  }
  func.func @transform_1(%arg0: i32) -> (i32, i32) {
    %c0_i32 = arith.constant 0 : i32
    %c0_i32_0 = arith.constant 0 : i32
    %c0_i32_1 = arith.constant 0 : i32
    return %c0_i32, %c0_i32_0 : i32, i32
  }
  func.func @transform_2(%arg0: i32) -> (i32, i32) {
    %c0_i32 = arith.constant 0 : i32
    %c0_i32_0 = arith.constant 0 : i32
    %c0_i32_1 = arith.constant 0 : i32
    return %c0_i32, %c0_i32_0 : i32, i32
  }
  func.func @transform_3(%arg0: i32) -> (i32, i32) {
    %c0_i32 = arith.constant 0 : i32
    %c0_i32_0 = arith.constant 0 : i32
    %c0_i32_1 = arith.constant 0 : i32
    return %c0_i32, %c0_i32_0 : i32, i32
  }
  func.func @transform_4(%arg0: i32) -> (i32, i32) {
    %c0_i32 = arith.constant 0 : i32
    %c0_i32_0 = arith.constant 0 : i32
    %c0_i32_1 = arith.constant 0 : i32
    return %c0_i32, %c0_i32_0 : i32, i32
  }
  func.func @transform_5(%arg0: i32) -> (i32, i32) {
    %c0_i32 = arith.constant 0 : i32
    %c0_i32_0 = arith.constant 0 : i32
    %c0_i32_1 = arith.constant 0 : i32
    return %c0_i32, %c0_i32_0 : i32, i32
  }
  func.func @transform_6(%arg0: i32) -> (i32, i32) {
    %c0_i32 = arith.constant 0 : i32
    %c0_i32_0 = arith.constant 0 : i32
    %c0_i32_1 = arith.constant 0 : i32
    return %c0_i32, %c0_i32_0 : i32, i32
  }
  func.func @transform_7(%arg0: i32) -> (i32, i32) {
    %c0_i32 = arith.constant 0 : i32
    %c0_i32_0 = arith.constant 0 : i32
    return %arg0, %c0_i32 : i32, i32
  }
}

</mosaic_0001>

<bundles_post_ra>
// kernel: three_layer_mlp.1
= control target key start
LH: loop header
LB: loop body
LE: loop exit
PB: predicated region body
PF: predicated region fallthrough
CT: control target
= control target key end

     0   :  { %12 = vsyncpa [#allocation3], 0  ;;  %s597_s0 = inlined_call_operand.vmem [shape: f32[16,32], index: 0, kind: input, shape index: {}]   ;;  %s598_s1 = inlined_call_operand.hbm [shape: bf16[32,64], index: 1, kind: input, shape index: {}]   ;;  %s599_s2 = inlined_call_operand.vmem [shape: f32[1,64], index: 2, kind: input, shape index: {}]   ;;  %s600_s3 = inlined_call_operand.vmem [shape: bf16[64,64], index: 3, kind: input, shape index: {}]   ;;  %s601_s4 = inlined_call_operand.hbm [shape: f32[1,64], index: 4, kind: input, shape index: {}]   ;;  %s602_s5 = inlined_call_operand.vmem [shape: bf16[64,16], index: 5, kind: input, shape index: {}]   ;;  %s603_s6 = inlined_call_operand.hbm [shape: f32[1,16], index: 6, kind: input, shape index: {}]   ;;  %s604_s7 = inlined_call_operand.hbm [shape: f32[16,16], index: 7, kind: output, shape index: {}]  }
   0x1   :  { %13 = vsyncpa [#allocation6], 0 }
   0x2   :  { %14 = vsyncpa [#allocation4], 0  ;;  %s497_s24 = smov [#allocation5]   ;;  %s498_s26 = smov [#allocation2]  }
   0x3   :  { %s39_s25 = sshll.u32 %s497_s24, 4  ;;  %s22_s27 = sshll.u32 %s498_s26, 4  ;;  %s40_s25 = int_to_ptr.vmem [resolvable:$true] %s39_s25  ;;  %s23_s27 = int_to_ptr.vmem [resolvable:$true] %s22_s27 }
   0x4   :  { %s419_s28 = scalar_lea.vmem %s40_s25, 16  ;;  %s423_s29 = scalar_lea.vmem %s40_s25, 32 }
   0x5   :  { %p420_p0 = scmp.ne.s32.totalorder %s40_s25, %s419_s28  ;;  %p424_p1 = scmp.lt.s32.totalorder %s40_s25, %s40_s25 }
   0x6   :  { %p425_p2 = scmp.lt.s32.totalorder %s423_s29, %s419_s28 }
   0x8   :  { %p426_p3 = por %p425_p2, %p424_p1 }
   0xa   :  { %p427_p4 = pnand %p426_p3, %p420_p0 }
   0xc   :  { %430 = shalt.err (!%p427_p4)
}
   0xd   :  { %42 = dma.hbm_to_vmem [thread:$0]  %s601_s4, 16, %s40_s25, [#allocation6]  }
   0xe   :  { %s439_s9 = scalar_lea.vmem %s23_s27, 256  ;;  %p444_p6 = scmp.lt.s32.totalorder %s23_s27, %s23_s27 }
   0xf   :  { %p440_p5 = scmp.ne.s32.totalorder %s23_s27, %s439_s9  ;;  %p445_p7 = scmp.lt.s32.totalorder %s439_s9, %s439_s9 }
  0x11   :  { %p446_p8 = por %p445_p7, %p444_p6 }
  0x13   :  { %p447_p9 = pnand %p446_p8, %p440_p5 }
  0x15   :  { %450 = shalt.err (!%p447_p9)
}
  0x16   :  { %s499_s10 = smov 64   ;;  %s500_s11 = smov 4  }
  0x17   :  { %28 = dma.hbm_to_vmem [thread:$0]  %s598_s1, 256, %s23_s27, [#allocation3], %s499_s10, %s499_s10, %s500_s11  }
  0x18   :  { %s501_s14 = smov [#allocation7]  }
  0x19   :  { %s51_s15 = sshll.u32 %s501_s14, 4  ;;  %s52_s15 = int_to_ptr.vmem [resolvable:$true] %s51_s15 }
  0x1a   :  { %s459_s16 = scalar_lea.vmem %s52_s15, 16  ;;  %s463_s17 = scalar_lea.vmem %s52_s15, 32 }
  0x1b   :  { %p460_p10 = scmp.ne.s32.totalorder %s52_s15, %s459_s16  ;;  %p464_p11 = scmp.lt.s32.totalorder %s52_s15, %s52_s15 }
  0x1c   :  { %p465_p12 = scmp.lt.s32.totalorder %s463_s17, %s459_s16 }
  0x1e   :  { %p466_p13 = por %p465_p12, %p464_p11 }
  0x20   :  { %p467_p0 = pnand %p466_p13, %p460_p10 }
  0x22   :  { %470 = shalt.err (!%p467_p0)
}
  0x23   :  { %54 = dma.hbm_to_vmem [thread:$0]  %s603_s6, 16, %s52_s15, [#allocation6]  }
  0x24   :  { %491 = dma.done.wait [#allocation3], 256  }
  0x25   :  { %492 = vsyncadd [#allocation3], 4294967040 }
  0x26   :  { %493 = dma.done.wait [#allocation6], 32  }
  0x27   :  { %494 = vsyncadd [#allocation6], 4294967264  ;;  %v502_v0 = vmov 0.0   ;;  %vm503_vm0 = vmmov 0   ;;  %v401_v1 = vld [vmem:[#allocation2 + $0x8] sm:$0xff]   ;;  %v402_v2 = vld [vmem:[#allocation2] sm:$0xff]  }
  0x28   :  { %359 = vmatprep.subr.bf16.mxu0 %v502_v0  ;;  %363 = vmatprep.mubr.msk.bf16.mxu0 %vm503_vm0, %v502_v0  ;;  %v65_v3 = vld [vmem:[%s597_s0] sm:$0xff]  ;;  %v66_v4 = vld [vmem:[%s597_s0 + $0x8] sm:$0xff]  ;;  %vm91_vm1 = vcmask 261120   ;;  %v403_v5 = vld [vmem:[%s600_s3 + $0x18] sm:$0xff]   ;;  %vm178_vm2 = vcmask 523264   ;;  %vm309_vm3 = vcmask 130048  }
  0x29   :  { %367 = vmatprep.subr.bf16.mxu1 %v502_v0  ;;  %375 = vmatprep.mubr.msk.bf16.mxu1 %vm503_vm0, %v502_v0  ;;  %v67_v6 = vpack.c.bf16 %v66_v4, %v65_v3  ;;  %v404_v7 = vld [vmem:[%s600_s3 + $0x10] sm:$0xff]   ;;  %v405_v8 = vld [vmem:[%s600_s3 + $0x8] sm:$0xff]   ;;  %v406_v9 = vld [vmem:[%s600_s3] sm:$0xff]   ;;  %s504_s13 = smov [#allocation8]  }
  0x2a   :  { %360 = vmatpush3.bf16.msra.mxu0 %v401_v1  ;;  %368 = vmatpush3.bf16.msra.mxu1 %v403_v5  ;;  %v407_v10 = vld [vmem:[%s602_s5 + $0x18] sm:$0xff]   ;;  %v330_v11 = vld [vmem:[%s599_s2] ss:$0 sm:$0xff]  ;;  %v408_v21 = vld [vmem:[%s602_s5 + $0x10] sm:$0xff]   ;;  %s317_s14 = sshll.u32 %s504_s13, 4  ;;  %s318_s14 = int_to_ptr.vmem [resolvable:$true] %s317_s14 }
  0x2b   :  { %361 = vmatprep.subr.bf16.mxu0 %v502_v0  ;;  %369 = vmatprep.subr.bf16.mxu1 %v502_v0  ;;  %v409_v22 = vld [vmem:[%s602_s5 + $0x8] sm:$0xff]   ;;  %v410_v23 = vld [vmem:[%s602_s5] sm:$0xff]   ;;  %v334_v24 = vld [vmem:[#allocation5] ss:$0 sm:$0xff]  ;;  %s471_s5 = scalar_lea.vmem %s318_s14, 256  ;;  %p476_p2 = scmp.lt.s32.totalorder %s318_s14, %s318_s14 }
  0x2c   :  { %v340_v34 = vld [vmem:[#allocation7] ss:$0 sm:$0xff]  ;;  %p472_p1 = scmp.ne.s32.totalorder %s318_s14, %s471_s5  ;;  %p477_p3 = scmp.lt.s32.totalorder %s471_s5, %s471_s5 }
  0x2e   :  { %362 = vmatpush3.bf16.msra.mxu0 %v402_v2  ;;  %370 = vmatpush3.bf16.msra.mxu1 %v404_v7  ;;  %p478_p4 = por %p477_p3, %p476_p2 }
  0x2f   :  { %379 = vmatprep.subr.bf16.mxu0 %v502_v0  ;;  %371 = vmatprep.subr.bf16.mxu1 %v502_v0 }
  0x30   :  { %p479_p5 = pnand %p478_p4, %p472_p1 }
  0x31   :  { %364 = vmatmul.mubr.msk.bf16.vlgmr.msra.gmra.mxu0 %vm91_vm1, %v67_v6 }
  0x32   :  { %387 = vmatprep.mubr.msk.bf16.mxu0 %vm503_vm0, %v502_v0  ;;  %372 = vmatpush3.bf16.msra.mxu1 %v405_v8 }
  0x33   :  { %373 = vmatprep.subr.bf16.mxu1 %v502_v0  ;;  %380 = vmatpush3.bf16.msra.mxu0 %v407_v10 }
  0x34   :  { %381 = vmatprep.subr.bf16.mxu0 %v502_v0 }
  0x36   :  { %374 = vmatpush3.bf16.msra.mxu1 %v406_v9 }
  0x37   :  { %382 = vmatpush3.bf16.msra.mxu0 %v408_v21 }
  0x38   :  { %383 = vmatprep.subr.bf16.mxu0 %v502_v0 }
  0x3b   :  { %384 = vmatpush3.bf16.msra.mxu0 %v409_v22 }
  0x3c   :  { %385 = vmatprep.subr.bf16.mxu0 %v502_v0 }
  0x3f   :  { %386 = vmatpush3.bf16.msra.mxu0 %v410_v23 }
  0xf1   :  { %v129_v12 = vpop.f32.mrf.mxu0 }
  0xf2   :  { %v130_v14 = vadd.f32 %v330_v11, %v129_v12 }
  0xf3   :  { %v365_v13 = vpop.f32.mrf.mxu0 }
  0xf4   :  { %v136_v18 = vmax.f32 %v130_v14, 0.0 }
  0xf5   :  { %v132_v15 = vpop.f32.mrf.mxu0 }
  0xf6   :  { %v133_v16 = vadd.f32 %v330_v11, %v132_v15 }
  0xf7   :  { %v366_v17 = vpop.f32.mrf.mxu0 }
  0xf8   :  { %v137_v19 = vmax.f32 %v133_v16, 0.0 }
  0xfa   :  { %v138_v20 = vpack.c.bf16 %v137_v19, %v136_v18 }
  0xfc   :  { %376 = vmatmul.mubr.msk.bf16.vlgmr.msra.gmra.mxu1 %vm178_vm2, %v138_v20 }
 0x1bc   :  { %v216_v25 = vpop.f32.mrf.mxu1 }
 0x1bd   :  { %v217_v27 = vadd.f32 %v334_v24, %v216_v25 }
 0x1be   :  { %v377_v26 = vpop.f32.mrf.mxu1 }
 0x1bf   :  { %v223_v31 = vmax.f32 %v217_v27, 0.0 }
 0x1c0   :  { %v219_v28 = vpop.f32.mrf.mxu1 }
 0x1c1   :  { %v220_v29 = vadd.f32 %v334_v24, %v219_v28 }
 0x1c2   :  { %v378_v30 = vpop.f32.mrf.mxu1 }
 0x1c3   :  { %v224_v32 = vmax.f32 %v220_v29, 0.0 }
 0x1c5   :  { %v225_v33 = vpack.c.bf16 %v224_v32, %v223_v31 }
 0x1c7   :  { %388 = vmatmul.mubr.msk.bf16.vlgmr.msra.gmra.mxu0 %vm178_vm2, %v225_v33 }
 0x287   :  { %v302_v35 = vpop.f32.mrf.mxu0 }
 0x288   :  { %v303_v36 = vadd.f32 %v340_v34, %v302_v35 }
 0x289   :  { %v389_v37 = vpop.f32.mrf.mxu0 }
 0x28a   :  { %310 = vst.msk [vmem:[#allocation8] sm:$0xff] %vm309_vm3, %v303_v36 }
 0x28b   :  { %v305_v38 = vpop.f32.mrf.mxu0 }
 0x28c   :  { %v306_v39 = vadd.f32 %v340_v34, %v305_v38 }
 0x28d   :  { %v390_v40 = vpop.f32.mrf.mxu0 }
 0x28e   :  { %311 = vst.msk [vmem:[#allocation8 + $0x8] sm:$0xff] %vm309_vm3, %v306_v39 }
 0x28f   :  { %482 = shalt.err (!%p479_p5)
}
 0x290   :  { %s505_s15 = smov 128   ;;  %s506_s16 = smov 8  }
 0x291   :  { %323 = dma.vmem_to_hbm [thread:$0]  %s318_s14, 256, %s604_s7, [#allocation4], %s505_s15, %s505_s15, %s506_s16  }
 0x292   :  { %495 = dma.done.wait [#allocation4], 256  }
 0x293   :  { %496 = vsyncadd [#allocation4], 4294967040 }
 0x294   :  { %327 = vsyncpa [#allocation3], 1 }
 0x295   :  { %328 = vsyncpa [#allocation6], 1 }
 0x296   :  { %329 = vsyncpa [#allocation4], 1 }

</bundles_post_ra>
